<compile_context>
chip_gen: v5e
topology: v5e:2x2
jax: 0.10.0
libtpu: 0.0.40
codegen_flags: <defaults>
</compile_context>

<pallas_src>
import numpy as np
import jax
import jax.numpy as jnp
from jax.experimental import pallas as pl
from jax.experimental.pallas import tpu as pltpu

# ---------------- irreps configuration ----------------
MUL = 8                      # multiplicity of every spherical order
LMAX = 2
NUM_SPHERICAL = LMAX + 1
DIMS = [MUL * (2 * l + 1) for l in range(NUM_SPHERICAL)]   # [8, 24, 40]
D_IN = sum(DIMS)             # 72
D_SCALAR = DIMS[0]           # 8
D_GATED = D_IN - D_SCALAR    # 64


# ------------- e3nn Activation normalization constants -------------
def _normalize2mom_const(f):
    # e3nn.nn.Activation wraps each act with normalize2mom: scale so E_{x~N(0,1)}[f(x)^2] = 1.
    # TODO(synk): e3nn estimates this constant with 1e6 torch.randn samples; we use
    # Gauss-Hermite quadrature (deterministic, matches to ~1e-3 on the constant).
    t, w = np.polynomial.hermite.hermgauss(128)
    x = np.sqrt(2.0) * t
    second_moment = (w * f(x) ** 2).sum() / np.sqrt(np.pi)
    return float(second_moment ** -0.5)


def _np_sigmoid(x):
    return 1.0 / (1.0 + np.exp(-x))


CST_SCALAR = _normalize2mom_const(lambda x: x * _np_sigmoid(x))  # act_scalars = SiLU
CST_GATE = _normalize2mom_const(_np_sigmoid)                     # act_gates  = Sigmoid


def _build_expand_matrix():
    """(D_SCALAR, D_IN) matrix mapping sigmoid(scalars) -> per-column multipliers of x."""
    expand = np.zeros((D_SCALAR, D_IN), dtype=np.float32)
    # Scalar block: x * CST_SCALAR * sigmoid(x) == CST_SCALAR * silu(x).
    expand[:, :D_SCALAR] = np.eye(D_SCALAR, dtype=np.float32) * CST_SCALAR
    # Gated blocks: gate channel c multiplies its (2l+1)-vector, scaled by CST_GATE.
    off = D_SCALAR
    for l in range(1, NUM_SPHERICAL):
        deg = 2 * l + 1
        for c in range(MUL):
            expand[c, off + c * deg: off + (c + 1) * deg] = CST_GATE
        off += MUL * deg
    return jnp.asarray(expand)


# ---------------- Pallas kernel ----------------
def scalar_activation_kernel(x_ref, expand_ref, o_ref):
    # Load the tile once; do the nonlinearity in f32 regardless of input dtype.
    x = x_ref[...].astype(jnp.float32)                      # (TM, 72)
    gates = jax.nn.sigmoid(x[:, :D_SCALAR])                 # (TM, 8)  EUP
    # Expand gates to per-column multipliers via a constant matrix (MXU — idle slot).
    g = jnp.dot(gates, expand_ref[...],
                preferred_element_type=jnp.float32)         # (TM, 72)
    # One fused multiply + single full-tile store (no concatenate, no partial stores).
    o_ref[...] = (x * g).astype(o_ref.dtype)


def scalar_activation(features, *, tile_m=None):
    N, D = features.shape
    assert D == D_IN, f"expected last dim {D_IN}, got {D}"

    if tile_m is None:
        # Large tiles to amortize per-grid-step overhead; keep >= 2 grid steps when
        # possible (v7x megacore), cap at 1024 rows so 4 double-buffered lane-padded
        # tiles stay well under v5e's 16 MiB scoped VMEM.
        tile_m = max(8, min(1024, pl.next_power_of_2(pl.cdiv(N, 2))))

    # Pad N up to a multiple of tile_m (padded rows produce finite garbage that is
    # sliced off below; sigmoid(0)*0 = 0, no NaNs).
    n_pad = (-N) % tile_m
    x = features if n_pad == 0 else jnp.pad(features, ((0, n_pad), (0, 0)))
    n_padded = N + n_pad
    grid_m = n_padded // tile_m

    expand = _build_expand_matrix()

    bytes_elem = jnp.dtype(features.dtype).itemsize
    cost = pl.CostEstimate(
        flops=int(n_padded * (2 * D_SCALAR * D_IN + D_IN)),
        transcendentals=int(n_padded * D_SCALAR),
        bytes_accessed=int(2 * n_padded * D_IN * bytes_elem),
    )

    out = pl.pallas_call(
        scalar_activation_kernel,
        out_shape=jax.ShapeDtypeStruct((n_padded, D_IN), features.dtype),
        grid_spec=pltpu.PrefetchScalarGridSpec(
            num_scalar_prefetch=0,
            grid=(grid_m,),
            in_specs=[
                pl.BlockSpec((tile_m, D_IN), lambda i: (i, 0)),
                pl.BlockSpec((D_SCALAR, D_IN), lambda i: (0, 0)),
            ],
            out_specs=pl.BlockSpec((tile_m, D_IN), lambda i: (i, 0)),
        ),
        compiler_params=pltpu.CompilerParams(dimension_semantics=("parallel",)),
        cost_estimate=cost,
    )(x, expand)

    return out[:N] if n_pad else out


# ---------------- pure-JAX reference for a correctness check ----------------
def scalar_activation_ref(features):
    x = features.astype(jnp.float32)
    scalars = x[:, :D_SCALAR]
    gated = x[:, D_SCALAR:]
    scalars_out = CST_SCALAR * jax.nn.silu(scalars)
    gates = CST_GATE * jax.nn.sigmoid(scalars)
    outs = [scalars_out]
    off = 0
    for l in range(1, NUM_SPHERICAL):
        deg = 2 * l + 1
        blk = gated[:, off:off + MUL * deg].reshape(-1, MUL, deg)
        outs.append((gates[:, :, None] * blk).reshape(-1, MUL * deg))
        off += MUL * deg
    return jnp.concatenate(outs, axis=-1).astype(features.dtype)


if __name__ == "__main__":
    key = jax.random.PRNGKey(0)

    # Small, deterministic test shapes.
    N1 = 64                                   # divides tile evenly
    feats1 = jax.random.normal(key, (N1, D_IN), dtype=jnp.float32)
    out1 = jax.block_until_ready(scalar_activation(feats1))
    ref1 = scalar_activation_ref(feats1)
    assert out1.shape == (N1, D_IN)
    np.testing.assert_allclose(np.asarray(out1), np.asarray(ref1), rtol=1e-5, atol=1e-5)

    # Non-multiple batch size exercises the padding path.
    N2 = 50
    feats2 = jax.random.normal(jax.random.PRNGKey(1), (N2, D_IN), dtype=jnp.float32)
    out2 = jax.block_until_ready(scalar_activation(feats2))
    ref2 = scalar_activation_ref(feats2)
    assert out2.shape == (N2, D_IN)
    np.testing.assert_allclose(np.asarray(out2), np.asarray(ref2), rtol=1e-5, atol=1e-5)

    print("KERNEL_OK")
</pallas_src>

<mosaic_0001>
module attributes {stable_mosaic.version = 11 : i64} {
  func.func @scalar_activation_kernel(%arg0: i32, %arg1: memref<32x72xf32, #tpu.memory_space<vmem>>, %arg2: memref<8x72xf32, #tpu.memory_space<vmem>>, %arg3: memref<32x72xf32, #tpu.memory_space<vmem>>) attributes {dimension_semantics = [#tpu.dimension_semantics<parallel>], iteration_bounds = array<i64: 2>, scalar_prefetch = 0 : i64, scratch_operands = 0 : i64, tpu.core_type = #tpu.core_type<tc>, window_params = [{transform_indices = @transform_0, window_bounds = array<i64: 32, 72>}, {pipeline_mode = #tpu.pipeline_mode<synchronous>, transform_indices = @transform_1, window_bounds = array<i64: 8, 72>}, {transform_indices = @transform_2, window_bounds = array<i64: 32, 72>}]} {
    %c0 = arith.constant 0 : index
    %c0_0 = arith.constant 0 : index
    %0 = vector.load %arg1[%c0, %c0_0] : memref<32x72xf32, #tpu.memory_space<vmem>>, vector<32x72xf32>
    %1 = vector.extract_strided_slice %0 {offsets = [0, 0], sizes = [32, 8], strides = [1, 1]} : vector<32x72xf32> to vector<32x8xf32>
    %2 = arith.negf %1 : vector<32x8xf32>
    %3 = math.exp %2 : vector<32x8xf32>
    %cst = arith.constant 1.000000e+00 : f32
    %4 = vector.broadcast %cst : f32 to vector<32x8xf32>
    %5 = arith.addf %4, %3 : vector<32x8xf32>
    %6 = arith.divf %4, %5 : vector<32x8xf32>
    %c0_1 = arith.constant 0 : index
    %c0_2 = arith.constant 0 : index
    %7 = vector.load %arg2[%c0_1, %c0_2] : memref<8x72xf32, #tpu.memory_space<vmem>>, vector<8x72xf32>
    %cst_3 = arith.constant dense<0.000000e+00> : vector<32x72xf32>
    %8 = tpu.matmul %6, %7, %cst_3 {dimension_numbers = #tpu.dot_dimension_numbers<[1], [0], [0], [1], [0, 0, 1, 1], [], []>} : vector<32x8xf32>, vector<8x72xf32>, vector<32x72xf32> -> vector<32x72xf32>
    %9 = arith.mulf %0, %8 : vector<32x72xf32>
    %c0_4 = arith.constant 0 : index
    %c0_5 = arith.constant 0 : index
    %10 = vector.load %arg3[%c0_4, %c0_5] : memref<32x72xf32, #tpu.memory_space<vmem>>, vector<32x72xf32>
    tpu.vector_store %arg3[%c0_4, %c0_5], %9 {strides = array<i32>} : memref<32x72xf32, #tpu.memory_space<vmem>>, vector<32x72xf32>,
    return
  }
  func.func @transform_0(%arg0: i32) -> (i32, i32) {
    %c0_i32 = arith.constant 0 : i32
    %c0_i32_0 = arith.constant 0 : i32
    return %arg0, %c0_i32 : i32, i32
  }
  func.func @transform_1(%arg0: i32) -> (i32, i32) {
    %c0_i32 = arith.constant 0 : i32
    %c0_i32_0 = arith.constant 0 : i32
    %c0_i32_1 = arith.constant 0 : i32
    return %c0_i32, %c0_i32_0 : i32, i32
  }
  func.func @transform_2(%arg0: i32) -> (i32, i32) {
    %c0_i32 = arith.constant 0 : i32
    %c0_i32_0 = arith.constant 0 : i32
    return %arg0, %c0_i32 : i32, i32
  }
}

</mosaic_0001>

<bundles_post_ra>
// kernel: tpu_custom_call.1
= control target key start
LH: loop header
LB: loop body
LE: loop exit
PB: predicated region body
PF: predicated region fallthrough
CT: control target
= control target key end

     0   :  { %7 = vsyncpa [#allocation3], 0  ;;  %s867_s0 = inlined_call_operand.hbm [shape: f32[64,72], index: 0, kind: input, shape index: {}]   ;;  %s868_s1 = inlined_call_operand.hbm [shape: f32[8,72], index: 1, kind: input, shape index: {}]   ;;  %s869_s2 = inlined_call_operand.hbm [shape: f32[64,72], index: 2, kind: output, shape index: {}]  }
   0x1   :  { %9 = vsyncpa [#allocation3 + $0x1], 0 }
   0x2   :  { %10 = vsyncpa [#allocation6], 0 }
   0x3   :  { %11 = vsyncpa [#allocation4], 0 }
   0x4   :  { %13 = vsyncpa [#allocation4 + $0x1], 0  ;;  %s670_s9 = smov 0   ;;  %s672_s10 = smov 0  }
   0x5   :  { %s674_s11 = smov 0   ;;  %s676_s12 = smov 0  }
   0x6 LB: > { %s691_s13 = sadd.s32 4294967295, %s648_s12   ;;  %s412_s14 = sadd.s32 4294967294, %s648_s12   ;;  %s648_s12 = sphi %s676_s12, %s888_s12   ;;  %s644_s11 = sphi %s674_s11, %s887_s11   ;;  %s640_s10 = sphi %s672_s10, %s886_s10   ;;  %s636_s9 = sphi %s670_s9, %s885_s9  }
   0x7   : > { %s695_s15 = sadd.s32 1, %s648_s12   ;;  %s26_s16 = sadd.s32 1, %s644_s11 }
   0x8   : > { %s23_s17 = ssub.s32 %s648_s12, %s695_s15  ;;  %p33_p0 = scmp.ne.s32.totalorder %s644_s11, %s640_s10 }
   0x9   : > { %p24_p1 = scmp.eq.s32.totalorder %s23_s17, 0  ;;  %p34_p2 = scmp.eq.s32.totalorder %s648_s12, 0 }
   0xa   : > { %p39_p3 = scmp.ne.s32.totalorder %s640_s10, %s636_s9  ;;  %p40_p4 = scmp.eq.s32.totalorder %s691_s13, 0 }
   0xb   : > { %s707_s18 = scalar_select %p24_p1, %s644_s11, %s26_s16  }
   0xc   : > { %p709_p5 = por %p34_p2, %p33_p0  ;;  %p715_p6 = por %p40_p4, %p39_p3 }
   0xd   : > { %p84_p7 = scmp.eq.s32.totalorder %s691_s13, 1  ;;  %p90_p8 = scmp.eq.s32.totalorder %s412_s14, 1 }
   0xe   : > { %p413_p9 = scmp.ge.s32.totalorder %s648_s12, 1  ;;  %p97_p10 = scmp.lt.s32.totalorder %s648_s12, 3 }
   0xf   : > { %p722_p11 = por %p84_p7, %p33_p0  ;;  %p726_p12 = por %p90_p8, %p39_p3 }
  0x10   : > { %p730_p13 = pnand %p413_p9, %p97_p10  ;;  %s109_s26 = sshll.u32 %s868_s1, 4  ;;  %s110_s26 = int_to_ptr.hbm [resolvable:$true] %s109_s26 }
  0x11   : > { %s650_s27 = smov [#allocation5]   ;;  %p462_p3 = scmp.lt.s32.totalorder %s648_s12, 2 }
  0x12   : > { %p449_p1 = pneg %p730_p13  ;;  %s111_s28 = sshll.u32 %s650_s27, 4  ;;  %s112_s28 = int_to_ptr.vmem [resolvable:$true] %s111_s28 }
  0x13   : > { %s122_s29 = sand.u32 1, %s644_s11   ;;  %p746_p7 = pnand %p462_p3, %p709_p5 }
  0x14   : > { %p450_p2 = pnand %p449_p1, %p40_p4  ;;  %s416_s3 = sshll.u32 %s122_s29, 5 }
  0x15   : > { %s436_s4 = sshll.u32 %s648_s12, 5  ;;  %s126_s14 = scalar_lea.vmem [#allocation2], %s416_s3 }
  0x16   : > { %452 = dma.hbm_to_vmem [thread:$0]  (!%p450_p2), %s110_s26, 128, %s112_s28, [#allocation6]  }
  0x17   : > { %s131_s7 = scalar_lea.hbm %s867_s0, %s436_s4  ;;  %s134_s16 = sshll.u32 %s126_s14, 4  ;;  %s135_s16 = int_to_ptr.vmem [resolvable:$true] %s134_s16 }
  0x18   : > { %s132_s8 = sshll.u32 %s131_s7, 4  ;;  %s123_s17 = scalar_lea.sflag [#allocation3], %s122_s29  ;;  %s133_s8 = int_to_ptr.hbm [resolvable:$true] %s132_s8 }
  0x19   : > { %s548_s24 = sshra.s32 %s133_s8, 4  ;;  %p552_p8 = pneg %p746_p7  ;;  %s549_s24 = int_to_ptr.hbm [resolvable:$true] %s548_s24 }
  0x1a   : > { %s550_s19 = scalar_lea.hbm %s549_s24, 32  ;;  %s555_s27 = scalar_lea.hbm %s867_s0, 64 }
  0x1b   : > { %p551_p5 = scmp.ne.s32.totalorder %s549_s24, %s550_s19  ;;  %p556_p1 = scmp.lt.s32.totalorder %s549_s24, %s867_s0 }
  0x1c   : > { %p557_p2 = scmp.lt.s32.totalorder %s555_s27, %s550_s19 }
  0x1d   : > { %p553_p9 = pnand %p552_p8, %p551_p5 }
  0x1e   : > { %p558_p3 = por %p557_p2, %p556_p1 }
  0x1f   : > { %p554_p10 = pneg %p553_p9 }
  0x21   : > { %p559_p0 = pnand %p558_p3, %p554_p10 }
  0x23   : > { %562 = shalt.err (!%p559_p0)
}
  0x24   : > { %s651_s29 = smov 128   ;;  %s652_s3 = smov 8  }
  0x25   : > { %456 = dma.hbm_to_vmem [thread:$0]  (!%p746_p7), %s133_s8, 512, %s135_s16, %s123_s17, %s651_s29, %s651_s29, %s652_s3  }
  0x26   : > { %146 = sbr.rel (%p730_p13) target bundleno = 214 (0xd6), region = 28  ;;  %s767_s5 = sand.u32 (!%p730_p13), 1, %s640_s10  }
  0x27   : > { %s420_s6 = sshll.u32 (!%p730_p13), %s767_s5, 5  ;;  %s149_s7 = scalar_lea.sflag (!%p730_p13), [#allocation3], %s767_s5 }
  0x28   : > { %s152_s14 = scalar_lea.vmem (!%p730_p13), [#allocation2], %s420_s6 }
  0x2b   : > { %623 = dma.done.wait (%p715_p6), %s149_s7, 512  }
  0x2c   : > { %625 = vsyncadd (%p715_p6), %s149_s7, 4294966784 }
  0x2d   : > { %627 = dma.done.wait (%p40_p4), [#allocation6], 128  }
  0x2e   : > { %629 = vsyncadd (%p40_p4), [#allocation6], 4294967168  ;;  %v261_v0 = vld [vmem:[#allocation5] sm:$0xff]  ;;  %v781_v1 = vld [vmem:[%s152_s14 + $0x10] sm:$0xff]  ;;  %vm262_vm1 = vcmask 64512   ;;  %s437_s20 = sshll.u32 %s691_s13, 5 }
  0x2f   : > { %v783_v2 = vld [vmem:[%s152_s14 + $0x18] sm:$0xff]  ;;  %439 = vmatpush.msra.mxu2 %v261_v0  ;;  %440 = vmatpush.msra.mxu3 %v261_v0  ;;  %v425_v3 = vmul.f32 -1.442695, %v781_v1  ;;  %v787_v5 = vld [vmem:[%s152_s14] sm:$0xff]  ;;  %v789_v6 = vld [vmem:[%s152_s14 + $0x8] sm:$0xff]  ;;  %s325_s8 = scalar_lea.hbm %s869_s2, %s437_s20  ;;  %s178_s16 = scalar_lea.vmem [#allocation7], %s420_s6 }
  0x30   : > { %v426_v4 = vmul.f32 -1.442695, %v783_v2  ;;  %290 = vmatpush.msra.mxu0 %v261_v0  ;;  %438 = vmatpush.msra.mxu1 %v261_v0  ;;  %v423_v7 = vmul.f32 -1.442695, %v787_v5  ;;  %v424_v8 = vmul.f32 -1.442695, %v789_v6 }
  0x31   : > { %502 = vpow2.f32 %v425_v3  ;;  %s326_s17 = sshll.u32 %s178_s16, 4  ;;  %s328_s24 = sshll.u32 %s325_s8, 4  ;;  %s832_s17 = int_to_ptr.vmem [resolvable:$true] %s326_s17  ;;  %s329_s24 = int_to_ptr.hbm [resolvable:$true] %s328_s24 }
  0x32   : > { %504 = vpow2.f32 %v426_v4  ;;  %s314_s13 = scalar_lea.sflag [#allocation4], %s767_s5  ;;  %s592_s19 = sshra.s32 %s329_s24, 4  ;;  %s593_s19 = int_to_ptr.hbm [resolvable:$true] %s592_s19 }
  0x33   : > { %506 = vpow2.f32 %v423_v7  ;;  %s594_s25 = scalar_lea.hbm %s593_s19, 32  ;;  %s598_s28 = scalar_lea.hbm %s869_s2, 64 }
  0x34   : > { %508 = vpow2.f32 %v424_v8  ;;  %p595_p4 = scmp.ne.s32.totalorder %s593_s19, %s594_s25  ;;  %p599_p0 = scmp.lt.s32.totalorder %s593_s19, %s869_s2 }
  0x35   : > { %p600_p7 = scmp.lt.s32.totalorder %s598_s28, %s594_s25 }
  0x36   : > { %p596_p6 = pnand %p595_p4, %p722_p11 }
  0x37   : > { %v503_v9 = vpop.eup %502  ;;  %p601_p5 = por %p600_p7, %p599_p0 }
  0x38   : > { %v505_v10 = vpop.eup %504  ;;  %v199_v11 = vadd.f32 1.0, %v503_v9  ;;  %p597_p13 = pneg %p596_p6 }
  0x39   : > { %v507_v12 = vpop.eup %506  ;;  %v200_v13 = vadd.f32 1.0, %v505_v10 }
  0x3a   : > { %v509_v14 = vpop.eup %508  ;;  %510 = vrcp.f32 %v199_v11  ;;  %v197_v15 = vadd.f32 1.0, %v507_v12  ;;  %v240_v17 = vand.u32 2147483647, %v199_v11  ;;  %v242_v18 = vand.u32 2147483648, %v199_v11  ;;  %p602_p8 = pnand %p601_p5, %p597_p13 }
  0x3b   : > { %512 = vrcp.f32 %v200_v13  ;;  %v198_v16 = vadd.f32 1.0, %v509_v14  ;;  %v255_v20 = vand.u32 2147483647, %v200_v13  ;;  %v257_v21 = vand.u32 2147483648, %v200_v13 }
  0x3c   : > { %514 = vrcp.f32 %v197_v15  ;;  %vm236_vm0 = vweird.f32 %v199_v11  ;;  %vm251_vm2 = vweird.f32 %v200_v13  ;;  %vm793_vm4 = vcmp.eq.f32.partialorder %v240_v17, 8.507059e+37 }
  0x3d   : > { %516 = vrcp.f32 %v198_v16  ;;  %v243_v27 = vor.u32 1.1754944e-38, %v242_v18  ;;  %vm797_vm6 = vcmp.eq.f32.partialorder %v255_v20, 8.507059e+37  ;;  %v258_v31 = vor.u32 1.1754944e-38, %v257_v21 }
  0x3e   : > { %vm206_vm7 = vweird.f32 %v197_v15  ;;  %v210_v35 = vand.u32 2147483647, %v197_v15  ;;  %v212_v38 = vand.u32 2147483648, %v197_v15  ;;  %vm221_vm9 = vweird.f32 %v198_v16 }
  0x3f   : > { %v227_v43 = vand.u32 2147483648, %v198_v16  ;;  %v225_v46 = vand.u32 2147483647, %v198_v16 }
  0x40   : > { %v511_v19 = vpop.eup %510  ;;  %v213_v51 = vor.u32 1.1754944e-38, %v212_v38  ;;  %vm211_vm14 = vcmp.eq.f32.partialorder %v210_v35, 8.507059e+37 }
  0x41   : > { %v513_v22 = vpop.eup %512  ;;  %v232_v23 = vmul.f32 %v511_v19, %v199_v11  ;;  %vm237_vm3 = vweird.f32 %v511_v19  ;;  %v228_v55 = vor.u32 1.1754944e-38, %v227_v43 }
  0x42   : > { %v247_v24 = vmul.f32 %v513_v22, %v200_v13  ;;  %v515_v28 = vpop.eup %514  ;;  %vm252_vm5 = vweird.f32 %v513_v22  ;;  %vm802_vm8 = vmor %vm236_vm0, %vm237_vm3  ;;  %vm226_vm0 = vcmp.eq.f32.partialorder %v225_v46, 8.507059e+37 }
  0x43   : > { %v233_v25 = vsub.f32 1.0, %v232_v23  ;;  %v517_v32 = vpop.eup %516  ;;  %v202_v34 = vmul.f32 %v515_v28, %v197_v15  ;;  %vm807_vm10 = vmor %vm251_vm2, %vm252_vm5  ;;  %vm207_vm11 = vweird.f32 %v515_v28  ;;  %vm308_vm2 = vcmask 588800  }
  0x44   : > { %v248_v29 = vsub.f32 1.0, %v247_v24  ;;  %v217_v39 = vmul.f32 %v517_v32, %v198_v16  ;;  %vm222_vm12 = vweird.f32 %v517_v32  ;;  %vm208_vm13 = vmor %vm206_vm7, %vm207_vm11 }
  0x45   : > { %v234_v33 = vmul.f32 %v511_v19, %v233_v25  ;;  %v203_v42 = vsub.f32 1.0, %v202_v34  ;;  %vm223_vm15 = vmor %vm221_vm9, %vm222_vm12 }
  0x46   : > { %v249_v37 = vmul.f32 %v513_v22, %v248_v29  ;;  %v218_v45 = vsub.f32 1.0, %v217_v39 }
  0x47   : > { %v235_v40 = vadd.f32 %v511_v19, %v234_v33  ;;  %v204_v48 = vmul.f32 %v515_v28, %v203_v42 }
  0x48   : > { %v250_v44 = vadd.f32 %v513_v22, %v249_v37  ;;  %v219_v52 = vmul.f32 %v517_v32, %v218_v45 }
  0x49   : > { %v239_v47 = vsel %vm802_vm8, %v511_v19, %v235_v40  ;;  %v205_v54 = vadd.f32 %v515_v28, %v204_v48 }
  0x4a   : > { %v244_v49 = vsel %vm793_vm4, %v243_v27, %v239_v47  ;;  %v254_v50 = vsel %vm807_vm10, %v513_v22, %v250_v44  ;;  %v220_v56 = vadd.f32 %v517_v32, %v219_v52 }
  0x4b   : > { %429 = vmatmul.msk.f32.vlgmr.msra.gmra.mxu2 %vm262_vm1, %v244_v49  ;;  %v259_v53 = vsel %vm797_vm6, %v258_v31, %v254_v50  ;;  %v209_v57 = vsel %vm208_vm13, %v515_v28, %v205_v54 }
  0x4c   : > { %430 = vmatmul.msk.f32.vlgmr.msra.gmra.mxu3 %vm262_vm1, %v259_v53  ;;  %v214_v58 = vsel %vm211_vm14, %v213_v51, %v209_v57  ;;  %v224_v59 = vsel %vm223_vm15, %v517_v32, %v220_v56 }
  0x4d   : > { %427 = vmatmul.msk.f32.vlgmr.msra.gmra.mxu0 %vm262_vm1, %v214_v58  ;;  %v229_v60 = vsel %vm226_vm0, %v228_v55, %v224_v59 }
  0x4e   : > { %428 = vmatmul.msk.f32.vlgmr.msra.gmra.mxu1 %vm262_vm1, %v229_v60 }
  0xca   : > { %v292_v61 = vpop.f32.mrf.mxu0 }
  0xcb   : > { %v304_v62 = vmul.f32 %v292_v61, %v787_v5  ;;  %v295_v63 = vpop.f32.mrf.mxu1 }
  0xcc   : > { %v305_v0 = vmul.f32 %v295_v63, %v789_v6 }
  0xcd   : > { %309 = vst.msk [vmem:[%s178_s16] sm:$0xff] %vm308_vm2, %v304_v62 }
  0xce   : > { %v298_v3 = vpop.f32.mrf.mxu2  ;;  %310 = vst.msk [vmem:[%s178_s16 + $0x8] sm:$0xff] %vm308_vm2, %v305_v0 }
  0xcf   : > { %v306_v4 = vmul.f32 %v298_v3, %v781_v1  ;;  %v301_v7 = vpop.f32.mrf.mxu3 }
  0xd0   : > { %v307_v8 = vmul.f32 %v301_v7, %v783_v2 }
  0xd1   : > { %311 = vst.msk [vmem:[%s178_s16 + $0x10] sm:$0xff] %vm308_vm2, %v306_v4 }
  0xd2   : > { %312 = vst.msk [vmem:[%s178_s16 + $0x18] sm:$0xff] %vm308_vm2, %v307_v8 }
  0xd3   : > { %605 = shalt.err (!%p602_p8)
}
  0xd4   : > { %s653_s3 = smov 128   ;;  %s654_s5 = smov 8  }
  0xd5   : > { %447 = dma.vmem_to_hbm [thread:$0]  (%p722_p11), %s832_s17, 512, %s329_s24, %s314_s13, %s653_s3, %s653_s3, %s654_s5  }
  0xd6 PF: > { %s343_s6 = sand.u32 1, %s636_s9   ;;  %p884_p9 = scmp.ge.s32.totalorder %s648_s12, 2 }
  0xd7   : > { %s344_s7 = scalar_lea.sflag [#allocation4], %s343_s6 }
  0xd8   : > { %p458_p10 = pnand %p884_p9, %p726_p12 }
  0xda   : > { %p459_p1 = pneg %p458_p10 }
  0xdc   : > { %631 = dma.done.wait (%p459_p1), %s344_s7, 512  }
  0xdd   : > { %633 = vsyncadd (%p459_p1), %s344_s7, 4294966784  ;;  %p16_p2 = scmp.ge.s32.totalorder %s695_s15, 4   ;;  %s885_s9 = smov %s640_s10 }
  0xde   : > { %s886_s10 = smov %s644_s11  ;;  %s887_s11 = smov %s707_s18 }
  0xdf   : > { %s888_s12 = smov %s695_s15  ;;  %18 = sbr.rel (!%p16_p2) target bundleno = 6 (0x6), region = 77 }
  0xe4   :  { %350 = vsyncpa [#allocation3], 1 }
  0xe5   :  { %352 = vsyncpa [#allocation3 + $0x1], 1 }
  0xe6   :  { %353 = vsyncpa [#allocation6], 1 }
  0xe7   :  { %354 = vsyncpa [#allocation4], 1 }
  0xe8   :  { %356 = vsyncpa [#allocation4 + $0x1], 1 }

</bundles_post_ra>
